<compile_context>
chip_gen: v7x
topology: tpu7x:2x2x1
jax: 0.10.0
libtpu: 0.0.40
codegen_flags: <defaults>
</compile_context>

<pallas_src>
from functools import partial

import jax
import jax.numpy as jnp
from jax.experimental import pallas as pl
from jax.experimental.pallas import tpu as pltpu


def _round_up(x: int, m: int) -> int:
    return ((x + m - 1) // m) * m


def _apply_flip_kernel(flip_ref, x_ref, o_ref):
    # flip_ref: VMEM (1, F) int8   -- prebaked binary mask row (resident, DMA'd once)
    # x_ref   : VMEM (R, F) x.dtype -- one block of batch rows
    # o_ref   : VMEM (R, F) x.dtype
    flip = flip_ref[...] != 0                 # (1, F) bool, broadcasts over rows
    xv = x_ref[...]
    o_ref[...] = jnp.where(flip, 1.0 - xv, xv)  # single select == x + b - 2*b*x for b in {0,1}


def compute_flip_row(mask, constraint):
    """mask: (1, D, H, W) -> (1, D*H*W) int8 row of (mask >= k-th largest value)."""
    flat = mask.reshape(1, -1).astype(jnp.float32)
    thr = jax.lax.top_k(flat[0], int(constraint))[0][-1]   # k-th largest (ties via >=)
    return (flat >= thr).astype(jnp.int8)


def apply_binary_mask(x, flip_row):
    """x: (N, D, H, W); flip_row: (1, D*H*W) int8. Returns flipped x, same shape/dtype."""
    n = x.shape[0]
    f = 1
    for d in x.shape[1:]:
        f *= int(d)
    x2d = x.reshape(n, f)                      # free reshape (contiguous), no HBM copy

    itemsize = jnp.dtype(x2d.dtype).itemsize
    row_mult = max(8, 32 // max(itemsize, 1))  # sublane packing: f32->8, bf16->16, int8->32
    row_bytes = f * itemsize

    # Size row blocks from a VMEM byte budget: 2x double-buffered input + 2x output
    # blocks must fit ~24 MiB (safe on v7x's 64 MiB per-TC VMEM; v5e/v6e have 128 MiB).
    vmem_budget = 24 << 20
    rows_block = max(row_mult,
                     (vmem_budget // (4 * max(row_bytes, 1))) // row_mult * row_mult)
    if n <= row_mult:
        rows_block = n                          # full-dim block, single step
    else:
        rows_block = min(rows_block, _round_up(n, row_mult))
        if pl.cdiv(n, rows_block) < 2:
            # >= 2 grid steps so v7x's two TensorCores both stream (no-op on v5e/v6e).
            rows_block = max(row_mult, _round_up((n + 1) // 2, row_mult))

    grid = (pl.cdiv(n, rows_block),)
    block_bytes = rows_block * row_bytes
    # 2x double-buffered input + 2x output buffers + resident flip row + headroom.
    vmem_limit = max(16 << 20, 4 * block_bytes + f + (2 << 20))

    out2d = pl.pallas_call(
        _apply_flip_kernel,
        out_shape=jax.ShapeDtypeStruct((n, f), x2d.dtype),
        grid=grid,
        in_specs=[
            pl.BlockSpec((1, f), lambda i: (0, 0)),            # flip row (resident)
            pl.BlockSpec((rows_block, f), lambda i: (i, 0)),    # x row block
        ],
        out_specs=pl.BlockSpec((rows_block, f), lambda i: (i, 0)),
        compiler_params=pltpu.CompilerParams(
            dimension_semantics=("parallel",),
            vmem_limit_bytes=int(vmem_limit),
        ),
    )(flip_row, x2d)

    return out2d.reshape(x.shape)


@partial(jax.jit, static_argnames=("constraint",))
def binary_mask_forward(x, mask, constraint):
    """Full forward (matches PyTorch apply_mask: recomputes threshold every call)."""
    f = 1
    for d in mask.shape[1:]:
        f *= int(d)
    if not (1 <= int(constraint) <= f):
        raise ValueError(f"constraint must be in [1, {f}], got {constraint}")
    flip_row = compute_flip_row(mask, constraint)
    return apply_binary_mask(x, flip_row)


if __name__ == "__main__":
    key = jax.random.PRNGKey(0)
    k_mask, k_x = jax.random.split(key)

    shape = (15, 15, 15)          # module default shape
    constraint = 100              # k for top-k
    batch = 2

    # Deterministic "parameter" init (stands in for torch.randn in __init__).
    mask = jax.random.normal(k_mask, (1,) + shape, dtype=jnp.float32)
    x = jax.random.normal(k_x, (batch,) + shape, dtype=jnp.float32)

    out = binary_mask_forward(x, mask, constraint)
    out = jax.block_until_ready(out)

    # Pure-JAX reference check (original arithmetic form).
    thr_ref = jax.lax.top_k(mask.reshape(-1), constraint)[0][-1]
    b_ref = (mask >= thr_ref).astype(jnp.float32)
    ref = x + b_ref - 2.0 * b_ref * x
    assert out.shape == (batch,) + shape
    assert out.dtype == x.dtype
    assert jnp.allclose(out, ref, atol=1e-6), "mismatch vs reference"

    print("KERNEL_OK")
</pallas_src>

<mosaic_0001>
module attributes {stable_mosaic.version = 11 : i64} {
  func.func @_apply_flip_kernel(%arg0: i32, %arg1: memref<1x3375xi8, #tpu.memory_space<vmem>>, %arg2: memref<2x3375xf32, #tpu.memory_space<vmem>>, %arg3: memref<2x3375xf32, #tpu.memory_space<vmem>>) attributes {dimension_semantics = [#tpu.dimension_semantics<parallel>], iteration_bounds = array<i64: 1>, scalar_prefetch = 0 : i64, scratch_operands = 0 : i64, tpu.core_type = #tpu.core_type<tc>, window_params = [{pipeline_mode = #tpu.pipeline_mode<synchronous>, transform_indices = @transform_0, window_bounds = array<i64: 1, 3375>}, {transform_indices = @transform_1, window_bounds = array<i64: 2, 3375>}, {transform_indices = @transform_2, window_bounds = array<i64: 2, 3375>}]} {
    %c0 = arith.constant 0 : index
    %c0_0 = arith.constant 0 : index
    %0 = vector.load %arg1[%c0, %c0_0] : memref<1x3375xi8, #tpu.memory_space<vmem>>, vector<1x3375xi8>
    %c0_i8 = arith.constant 0 : i8
    %1 = vector.broadcast %c0_i8 : i8 to vector<1x3375xi8>
    %2 = arith.cmpi ne, %0, %1 : vector<1x3375xi8>
    %c0_1 = arith.constant 0 : index
    %c0_2 = arith.constant 0 : index
    %3 = vector.load %arg2[%c0_1, %c0_2] : memref<2x3375xf32, #tpu.memory_space<vmem>>, vector<2x3375xf32>
    %cst = arith.constant 1.000000e+00 : f32
    %4 = vector.broadcast %cst : f32 to vector<2x3375xf32>
    %5 = arith.subf %4, %3 : vector<2x3375xf32>
    %6 = vector.shape_cast %2 : vector<1x3375xi1> to vector<1x3375xi1>
    %7 = vector.broadcast %6 : vector<1x3375xi1> to vector<2x3375xi1>
    %8 = arith.select %7, %5, %3 : vector<2x3375xi1>, vector<2x3375xf32>
    %c0_3 = arith.constant 0 : index
    %c0_4 = arith.constant 0 : index
    %9 = vector.load %arg3[%c0_3, %c0_4] : memref<2x3375xf32, #tpu.memory_space<vmem>>, vector<2x3375xf32>
    tpu.vector_store %arg3[%c0_3, %c0_4], %8 {strides = array<i32>} : memref<2x3375xf32, #tpu.memory_space<vmem>>, vector<2x3375xf32>,
    return
  }
  func.func @transform_0(%arg0: i32) -> (i32, i32) {
    %c0_i32 = arith.constant 0 : i32
    %c0_i32_0 = arith.constant 0 : i32
    %c0_i32_1 = arith.constant 0 : i32
    return %c0_i32, %c0_i32_0 : i32, i32
  }
  func.func @transform_1(%arg0: i32) -> (i32, i32) {
    %c0_i32 = arith.constant 0 : i32
    %c0_i32_0 = arith.constant 0 : i32
    return %arg0, %c0_i32 : i32, i32
  }
  func.func @transform_2(%arg0: i32) -> (i32, i32) {
    %c0_i32 = arith.constant 0 : i32
    %c0_i32_0 = arith.constant 0 : i32
    return %arg0, %c0_i32 : i32, i32
  }
}

</mosaic_0001>

<bundles_post_ra>
// kernel: binary_mask_forward.1
= control target key start
LH: loop header
LB: loop body
LE: loop exit
PB: predicated region body
PF: predicated region fallthrough
CT: control target
= control target key end

     0   :  { %v81_v0 = vlaneseq  ;;  %v886_v3 = vmov 1983009808   ;;  %v887_v8 = vmov 0   ;;  %s1143_s0 = inlined_call_operand.vmem [shape: s8[1,3375], index: 0, kind: input, shape index: {}]   ;;  %s1144_s1 = inlined_call_operand.vmem [shape: f32[2,3375], index: 1, kind: input, shape index: {}]   ;;  %s1145_s2 = inlined_call_operand.vmem [shape: f32[2,3375], index: 2, kind: output, shape index: {}]  }
   0x1   :  { %v13_v1 = vld [vmem:[%s1143_s0] sm:$0xff]  ;;  %v387_v4 = vunpack.c.l.s4 %v886_v3  ;;  %v912_v5 = vld [vmem:[%s1144_s1 + $0x8] sm:$0xff] }
   0x2   :  { %v21_v2 = vld [vmem:[%s1144_s1] sm:$0xff]  ;;  %vm17_vm0 = vnez %v13_v1  ;;  %v82_v7 = vshrl.u32 %v81_v0, 7  ;;  %v916_v12 = vsub.f32 1.0, %v912_v5  ;;  %v554_v20 = vcombine.high %v912_v5, %v912_v5  ;;  %v14_v39 = vld [vmem:[%s1143_s0 + $0x8] sm:$0xff] }
   0x3   :  { %v28_v6 = vsub.f32 1.0, %v21_v2  ;;  %v35_v9 = vsel %vm17_vm0, 16843009, %v887_v8  ;;  %v388_v10 = vunpack.c.0.s8 %v387_v4  ;;  %v537_v11 = vcombine.high %v21_v2, %v21_v2 }
   0x4   :  { %v39_v13 = vunpack.c.0.s8 %v35_v9  ;;  %v40_v14 = vunpack.c.1.s8 %v35_v9  ;;  %v918_v15 = vsub.s32 0, %v82_v7  ;;  %v920_v16 = vsub.s32 4, %v82_v7 }
   0x5   :  { %v385_v17 = vcombine.high %v28_v6, %v28_v6  ;;  %v922_v18 = vsub.s32 %v388_v10, %v82_v7  ;;  %v41_v19 = vunpack.c.2.s8 %v35_v9  ;;  %v42_v21 = vunpack.c.3.s8 %v35_v9  ;;  %v23_v7 = vld [vmem:[%s1144_s1 + $0x10] sm:$0xff] }
   0x6   :  { %vm53_vm1 = vcmp.ne.s32.totalorder %v39_v13, 0  ;;  %vm54_vm2 = vcmp.ne.s32.totalorder %v40_v14, 0  ;;  %v402_v22 = vcombine.high %v916_v12, %v916_v12  ;;  %vm18_vm13 = vnez %v14_v39 }
   0x7   :  { %v67_v23 = vsel %vm53_vm1, 1, %v887_v8  ;;  %v68_v24 = vsel %vm54_vm2, 1, %v887_v8  ;;  %v392_v25 = vrot.slane %v28_v6, %v922_v18  ;;  %v399_v26 = vrot.slane %v385_v17, %v922_v18 }
   0x8   :  { %v84_v27 = vrot.slane %v67_v23, %v918_v15  ;;  %v88_v28 = vrot.slane %v67_v23, %v920_v16  ;;  %v92_v29 = vrot.slane %v68_v24, %v918_v15  ;;  %v96_v30 = vrot.slane %v68_v24, %v920_v16 }
   0x9   :  { %v400_v31 = vcombine.high %v392_v25, %v392_v25  ;;  %v401_v32 = vcombine.high %v399_v26, %v399_v26  ;;  %v544_v33 = vrot.slane %v21_v2, %v922_v18  ;;  %v551_v34 = vrot.slane %v537_v11, %v922_v18 }
   0xa   :  { %vm189_vm3 = vcmp.ne.s32.totalorder %v84_v27, 0  ;;  %vm190_vm4 = vcmp.ne.s32.totalorder %v88_v28, 0  ;;  %vm191_vm5 = vcmp.ne.s32.totalorder %v92_v29, 0  ;;  %vm192_vm6 = vcmp.ne.s32.totalorder %v96_v30, 0 }
   0xb   :  { %v216_v35 = vsel %vm189_vm3, 1, %v887_v8  ;;  %v217_v36 = vsel %vm190_vm4, 1, %v887_v8  ;;  %v218_v37 = vsel %vm191_vm5, 1, %v887_v8  ;;  %v219_v38 = vsel %vm192_vm6, 1, %v887_v8 }
   0xc   :  { %v246_v40 = vrot.slane %v216_v35, %v918_v15  ;;  %v250_v41 = vrot.slane %v217_v36, %v918_v15  ;;  %v254_v42 = vrot.slane %v218_v37, %v918_v15  ;;  %v258_v43 = vrot.slane %v219_v38, %v918_v15 }
   0xd   :  { %v552_v44 = vcombine.high %v544_v33, %v544_v33  ;;  %v553_v45 = vcombine.high %v551_v34, %v551_v34  ;;  %vm55_vm7 = vcmp.ne.s32.totalorder %v41_v19, 0  ;;  %vm56_vm8 = vcmp.ne.s32.totalorder %v42_v21, 0 }
   0xe   :  { %vm351_vm9 = vcmp.eq.s32.totalorder %v246_v40, 1  ;;  %vm352_vm10 = vcmp.eq.s32.totalorder %v250_v41, 1  ;;  %vm353_vm11 = vcmp.eq.s32.totalorder %v254_v42, 1  ;;  %vm354_vm12 = vcmp.eq.s32.totalorder %v258_v43, 1 }
   0xf   :  { %v682_v46 = vsel %vm351_vm9, %v392_v25, %v544_v33  ;;  %v683_v47 = vsel %vm352_vm10, %v400_v31, %v552_v44  ;;  %v684_v48 = vsel %vm353_vm11, %v399_v26, %v551_v34  ;;  %v685_v49 = vsel %vm354_vm12, %v401_v32, %v553_v45 }
  0x10   :  { %v736_v50 = vcombine.low %v682_v46, %v683_v47  ;;  %v737_v51 = vcombine.low %v684_v48, %v685_v49  ;;  %v69_v52 = vsel %vm55_vm7, 1, %v887_v8  ;;  %v70_v53 = vsel %vm56_vm8, 1, %v887_v8  ;;  %v24_v48 = vld [vmem:[%s1144_s1 + $0x18] sm:$0xff] }
  0x11   :  { %v100_v54 = vrot.slane %v69_v52, %v918_v15  ;;  %v104_v55 = vrot.slane %v69_v52, %v920_v16  ;;  %v108_v56 = vrot.slane %v70_v53, %v918_v15  ;;  %v112_v57 = vrot.slane %v70_v53, %v920_v16 }
  0x12   :  { %v744_v58 = vrot.slane %v736_v50, %v922_v18  ;;  %v751_v59 = vrot.slane %v737_v51, %v922_v18  ;;  %v409_v60 = vrot.slane %v916_v12, %v922_v18  ;;  %v416_v61 = vrot.slane %v402_v22, %v922_v18 }
  0x13   :  { %vm193_vm14 = vcmp.ne.s32.totalorder %v100_v54, 0  ;;  %vm194_vm15 = vcmp.ne.s32.totalorder %v104_v55, 0  ;;  %vm195_vm0 = vcmp.ne.s32.totalorder %v108_v56, 0  ;;  %vm196_vm1 = vcmp.ne.s32.totalorder %v112_v57, 0 }
  0x14   :  { %v752_v62 = vcombine.low %v744_v58, %v751_v59  ;;  %v220_v63 = vsel %vm193_vm14, 1, %v887_v8  ;;  %v221_v0 = vsel %vm194_vm15, 1, %v887_v8  ;;  %v222_v1 = vsel %vm195_vm0, 1, %v887_v8 }
  0x15   :  { %v223_v2 = vsel %vm196_vm1, 1, %v887_v8  ;;  %v262_v3 = vrot.slane %v220_v63, %v918_v15  ;;  %v266_v4 = vrot.slane %v221_v0, %v918_v15  ;;  %v270_v6 = vrot.slane %v222_v1, %v918_v15 }
  0x16   :  { %861 = vst [vmem:[%s1145_s2] sm:$0xff] %v752_v62  ;;  %v274_v9 = vrot.slane %v223_v2, %v918_v15  ;;  %v417_v10 = vcombine.high %v409_v60, %v409_v60  ;;  %v418_v11 = vcombine.high %v416_v61, %v416_v61  ;;  %v561_v12 = vrot.slane %v912_v5, %v922_v18 }
  0x17   :  { %vm976_vm2 = vcmp.eq.s32.totalorder %v262_v3, 1  ;;  %vm356_vm3 = vcmp.eq.s32.totalorder %v266_v4, 1  ;;  %vm980_vm4 = vcmp.eq.s32.totalorder %v270_v6, 1  ;;  %v568_v17 = vrot.slane %v554_v20, %v922_v18 }
  0x18   :  { %vm358_vm5 = vcmp.eq.s32.totalorder %v274_v9, 1  ;;  %v569_v19 = vcombine.high %v561_v12, %v561_v12  ;;  %v686_v21 = vsel %vm976_vm2, %v409_v60, %v561_v12  ;;  %v30_v22 = vsub.f32 1.0, %v23_v7 }
  0x19   :  { %v570_v23 = vcombine.high %v568_v17, %v568_v17  ;;  %v688_v24 = vsel %vm980_vm4, %v416_v61, %v568_v17  ;;  %v36_v25 = vsel %vm18_vm13, 16843009, %v887_v8  ;;  %v571_v26 = vcombine.high %v23_v7, %v23_v7 }
  0x1a   :  { %v687_v27 = vsel %vm356_vm3, %v417_v10, %v569_v19  ;;  %v43_v28 = vunpack.c.0.s8 %v36_v25  ;;  %v44_v29 = vunpack.c.1.s8 %v36_v25  ;;  %v419_v30 = vcombine.high %v30_v22, %v30_v22 }
  0x1b   :  { %v689_v5 = vsel %vm358_vm5, %v418_v11, %v570_v23  ;;  %v753_v20 = vcombine.low %v686_v21, %v687_v27  ;;  %v426_v31 = vrot.slane %v30_v22, %v922_v18  ;;  %v578_v32 = vrot.slane %v23_v7, %v922_v18 }
  0x1c   :  { %v754_v33 = vcombine.low %v688_v24, %v689_v5  ;;  %vm57_vm6 = vcmp.ne.s32.totalorder %v43_v28, 0  ;;  %vm58_vm7 = vcmp.ne.s32.totalorder %v44_v29, 0  ;;  %v433_v34 = vrot.slane %v419_v30, %v922_v18  ;;  %v15_v28 = vld [vmem:[%s1143_s0 + $0x10] sm:$0xff]  ;;  %v25_v29 = vld [vmem:[%s1144_s1 + $0x20] sm:$0xff] }
  0x1d   :  { %v761_v35 = vrot.slane %v753_v20, %v922_v18  ;;  %v71_v36 = vsel %vm57_vm6, 1, %v887_v8  ;;  %v72_v37 = vsel %vm58_vm7, 1, %v887_v8  ;;  %v434_v38 = vcombine.high %v426_v31, %v426_v31 }
  0x1e   :  { %v768_v39 = vrot.slane %v754_v33, %v922_v18  ;;  %v116_v40 = vrot.slane %v71_v36, %v918_v15  ;;  %v120_v41 = vrot.slane %v71_v36, %v920_v16  ;;  %v124_v42 = vrot.slane %v72_v37, %v918_v15 }
  0x1f   :  { %v128_v43 = vrot.slane %v72_v37, %v920_v16  ;;  %v435_v44 = vcombine.high %v433_v34, %v433_v34  ;;  %v585_v45 = vrot.slane %v571_v26, %v922_v18  ;;  %v586_v46 = vcombine.high %v578_v32, %v578_v32 }
  0x20   :  { %v769_v47 = vcombine.low %v761_v35, %v768_v39  ;;  %vm197_vm8 = vcmp.ne.s32.totalorder %v116_v40, 0  ;;  %vm198_vm9 = vcmp.ne.s32.totalorder %v120_v41, 0  ;;  %vm199_vm10 = vcmp.ne.s32.totalorder %v124_v42, 0 }
  0x21   :  { %vm200_vm11 = vcmp.ne.s32.totalorder %v128_v43, 0  ;;  %v224_v49 = vsel %vm197_vm8, 1, %v887_v8  ;;  %v225_v50 = vsel %vm198_vm9, 1, %v887_v8  ;;  %v226_v51 = vsel %vm199_vm10, 1, %v887_v8 }
  0x22   :  { %862 = vst [vmem:[%s1145_s2 + $0x8] sm:$0xff] %v769_v47  ;;  %v227_v52 = vsel %vm200_vm11, 1, %v887_v8  ;;  %v278_v53 = vrot.slane %v224_v49, %v918_v15  ;;  %v282_v54 = vrot.slane %v225_v50, %v918_v15  ;;  %v286_v55 = vrot.slane %v226_v51, %v918_v15 }
  0x23   :  { %v290_v56 = vrot.slane %v227_v52, %v918_v15  ;;  %v587_v57 = vcombine.high %v585_v45, %v585_v45  ;;  %v31_v58 = vsub.f32 1.0, %v24_v48  ;;  %v45_v59 = vunpack.c.2.s8 %v36_v25 }
  0x24   :  { %vm359_vm12 = vcmp.eq.s32.totalorder %v278_v53, 1  ;;  %vm360_vm13 = vcmp.eq.s32.totalorder %v282_v54, 1  ;;  %vm361_vm14 = vcmp.eq.s32.totalorder %v286_v55, 1  ;;  %v46_v60 = vunpack.c.3.s8 %v36_v25 }
  0x25   :  { %vm362_vm15 = vcmp.eq.s32.totalorder %v290_v56, 1  ;;  %v690_v61 = vsel %vm359_vm12, %v426_v31, %v578_v32  ;;  %v691_v62 = vsel %vm360_vm13, %v434_v38, %v586_v46  ;;  %v692_v63 = vsel %vm361_vm14, %v433_v34, %v585_v45 }
  0x26   :  { %v693_v0 = vsel %vm362_vm15, %v435_v44, %v587_v57  ;;  %v770_v1 = vcombine.low %v690_v61, %v691_v62  ;;  %vm59_vm0 = vcmp.ne.s32.totalorder %v45_v59, 0  ;;  %vm60_vm1 = vcmp.ne.s32.totalorder %v46_v60, 0 }
  0x27   :  { %v771_v2 = vcombine.low %v692_v63, %v693_v0  ;;  %v73_v3 = vsel %vm59_vm0, 1, %v887_v8  ;;  %v74_v4 = vsel %vm60_vm1, 1, %v887_v8  ;;  %v436_v6 = vcombine.high %v31_v58, %v31_v58 }
  0x28   :  { %v778_v7 = vrot.slane %v770_v1, %v922_v18  ;;  %v132_v9 = vrot.slane %v73_v3, %v918_v15  ;;  %v136_v10 = vrot.slane %v73_v3, %v920_v16  ;;  %v140_v11 = vrot.slane %v74_v4, %v918_v15  ;;  %v26_v3 = vld [vmem:[%s1144_s1 + $0x28] sm:$0xff] }
  0x29   :  { %v785_v12 = vrot.slane %v771_v2, %v922_v18  ;;  %v144_v13 = vrot.slane %v74_v4, %v920_v16  ;;  %v443_v14 = vrot.slane %v31_v58, %v922_v18  ;;  %v450_v17 = vrot.slane %v436_v6, %v922_v18 }
  0x2a   :  { %vm201_vm2 = vcmp.ne.s32.totalorder %v132_v9, 0  ;;  %vm202_vm3 = vcmp.ne.s32.totalorder %v136_v10, 0  ;;  %vm203_vm4 = vcmp.ne.s32.totalorder %v140_v11, 0  ;;  %v588_v19 = vcombine.high %v24_v48, %v24_v48 }
  0x2b   :  { %v786_v21 = vcombine.low %v778_v7, %v785_v12  ;;  %vm204_vm5 = vcmp.ne.s32.totalorder %v144_v13, 0  ;;  %v228_v22 = vsel %vm201_vm2, 1, %v887_v8  ;;  %v229_v23 = vsel %vm202_vm3, 1, %v887_v8 }
  0x2c   :  { %v230_v24 = vsel %vm203_vm4, 1, %v887_v8  ;;  %v231_v25 = vsel %vm204_vm5, 1, %v887_v8  ;;  %v294_v26 = vrot.slane %v228_v22, %v918_v15  ;;  %v298_v27 = vrot.slane %v229_v23, %v918_v15 }
  0x2d   :  { %863 = vst [vmem:[%s1145_s2 + $0x10] sm:$0xff] %v786_v21  ;;  %v302_v30 = vrot.slane %v230_v24, %v918_v15  ;;  %v306_v5 = vrot.slane %v231_v25, %v918_v15  ;;  %v451_v20 = vcombine.high %v443_v14, %v443_v14  ;;  %v452_v31 = vcombine.high %v450_v17, %v450_v17 }
  0x2e   :  { %vm1047_vm6 = vcmp.eq.s32.totalorder %v294_v26, 1  ;;  %vm364_vm7 = vcmp.eq.s32.totalorder %v298_v27, 1  ;;  %v595_v33 = vrot.slane %v24_v48, %v922_v18  ;;  %v602_v34 = vrot.slane %v588_v19, %v922_v18 }
  0x2f   :  { %vm1053_vm8 = vcmp.eq.s32.totalorder %v302_v30, 1  ;;  %vm366_vm9 = vcmp.eq.s32.totalorder %v306_v5, 1  ;;  %vm19_vm10 = vnez %v15_v28  ;;  %v32_v36 = vsub.f32 1.0, %v25_v29 }
  0x30   :  { %v603_v37 = vcombine.high %v595_v33, %v595_v33  ;;  %v604_v38 = vcombine.high %v602_v34, %v602_v34  ;;  %v694_v39 = vsel %vm1047_vm6, %v443_v14, %v595_v33  ;;  %v696_v40 = vsel %vm1053_vm8, %v450_v17, %v602_v34 }
  0x31   :  { %v37_v41 = vsel %vm19_vm10, 16843009, %v887_v8  ;;  %v453_v42 = vcombine.high %v32_v36, %v32_v36  ;;  %v460_v43 = vrot.slane %v32_v36, %v922_v18  ;;  %v605_v44 = vcombine.high %v25_v29, %v25_v29 }
  0x32   :  { %v695_v45 = vsel %vm364_vm7, %v451_v20, %v603_v37  ;;  %v697_v46 = vsel %vm366_vm9, %v452_v31, %v604_v38  ;;  %v47_v47 = vunpack.c.0.s8 %v37_v41  ;;  %v48_v48 = vunpack.c.1.s8 %v37_v41 }
  0x33   :  { %v787_v49 = vcombine.low %v694_v39, %v695_v45  ;;  %v788_v50 = vcombine.low %v696_v40, %v697_v46  ;;  %v467_v51 = vrot.slane %v453_v42, %v922_v18  ;;  %v468_v52 = vcombine.high %v460_v43, %v460_v43  ;;  %v16_v42 = vld [vmem:[%s1143_s0 + $0x18] sm:$0x7] }
  0x34   :  { %vm61_vm11 = vcmp.ne.s32.totalorder %v47_v47, 0  ;;  %vm62_vm12 = vcmp.ne.s32.totalorder %v48_v48, 0  ;;  %v612_v53 = vrot.slane %v25_v29, %v922_v18  ;;  %v619_v54 = vrot.slane %v605_v44, %v922_v18 }
  0x35   :  { %v795_v55 = vrot.slane %v787_v49, %v922_v18  ;;  %v802_v56 = vrot.slane %v788_v50, %v922_v18  ;;  %v75_v57 = vsel %vm61_vm11, 1, %v887_v8  ;;  %v76_v58 = vsel %vm62_vm12, 1, %v887_v8 }
  0x36   :  { %v148_v59 = vrot.slane %v75_v57, %v918_v15  ;;  %v152_v60 = vrot.slane %v75_v57, %v920_v16  ;;  %v156_v61 = vrot.slane %v76_v58, %v918_v15  ;;  %v160_v62 = vrot.slane %v76_v58, %v920_v16 }
  0x37   :  { %v803_v63 = vcombine.low %v795_v55, %v802_v56  ;;  %v469_v0 = vcombine.high %v467_v51, %v467_v51  ;;  %v620_v1 = vcombine.high %v612_v53, %v612_v53  ;;  %v621_v2 = vcombine.high %v619_v54, %v619_v54 }
  0x38   :  { %vm205_vm13 = vcmp.ne.s32.totalorder %v148_v59, 0  ;;  %vm206_vm14 = vcmp.ne.s32.totalorder %v152_v60, 0  ;;  %vm207_vm15 = vcmp.ne.s32.totalorder %v156_v61, 0  ;;  %vm208_vm0 = vcmp.ne.s32.totalorder %v160_v62, 0 }
  0x39   :  { %864 = vst [vmem:[%s1145_s2 + $0x18] sm:$0xff] %v803_v63  ;;  %v232_v4 = vsel %vm205_vm13, 1, %v887_v8  ;;  %v233_v6 = vsel %vm206_vm14, 1, %v887_v8  ;;  %v234_v7 = vsel %vm207_vm15, 1, %v887_v8  ;;  %v235_v9 = vsel %vm208_vm0, 1, %v887_v8 }
  0x3a   :  { %v310_v10 = vrot.slane %v232_v4, %v918_v15  ;;  %v314_v11 = vrot.slane %v233_v6, %v918_v15  ;;  %v318_v12 = vrot.slane %v234_v7, %v918_v15  ;;  %v322_v13 = vrot.slane %v235_v9, %v918_v15 }
  0x3b   :  { %v33_v14 = vsub.f32 1.0, %v26_v3  ;;  %v49_v17 = vunpack.c.2.s8 %v37_v41  ;;  %v50_v19 = vunpack.c.3.s8 %v37_v41  ;;  %v622_v21 = vcombine.high %v26_v3, %v26_v3 }
  0x3c   :  { %vm367_vm1 = vcmp.eq.s32.totalorder %v310_v10, 1  ;;  %vm368_vm2 = vcmp.eq.s32.totalorder %v314_v11, 1  ;;  %vm369_vm3 = vcmp.eq.s32.totalorder %v318_v12, 1  ;;  %vm370_vm4 = vcmp.eq.s32.totalorder %v322_v13, 1 }
  0x3d   :  { %v698_v22 = vsel %vm367_vm1, %v460_v43, %v612_v53  ;;  %v699_v23 = vsel %vm368_vm2, %v468_v52, %v620_v1  ;;  %v700_v24 = vsel %vm369_vm3, %v467_v51, %v619_v54  ;;  %v701_v25 = vsel %vm370_vm4, %v469_v0, %v621_v2  ;;  %v27_v51 = vld [vmem:[%s1144_s1 + $0x30] sm:$0x3f] }
  0x3e   :  { %v804_v26 = vcombine.low %v698_v22, %v699_v23  ;;  %v805_v27 = vcombine.low %v700_v24, %v701_v25  ;;  %vm63_vm5 = vcmp.ne.s32.totalorder %v49_v17, 0  ;;  %vm64_vm6 = vcmp.ne.s32.totalorder %v50_v19, 0 }
  0x3f   :  { %v77_v28 = vsel %vm63_vm5, 1, %v887_v8  ;;  %v78_v29 = vsel %vm64_vm6, 1, %v887_v8  ;;  %v470_v30 = vcombine.high %v33_v14, %v33_v14  ;;  %v477_v5 = vrot.slane %v33_v14, %v922_v18 }
  0x40   :  { %v812_v20 = vrot.slane %v804_v26, %v922_v18  ;;  %v819_v31 = vrot.slane %v805_v27, %v922_v18  ;;  %v164_v32 = vrot.slane %v77_v28, %v918_v15  ;;  %v168_v33 = vrot.slane %v77_v28, %v920_v16 }
  0x41   :  { %v172_v34 = vrot.slane %v78_v29, %v918_v15  ;;  %v176_v35 = vrot.slane %v78_v29, %v920_v16  ;;  %v484_v36 = vrot.slane %v470_v30, %v922_v18  ;;  %v485_v37 = vcombine.high %v477_v5, %v477_v5 }
  0x42   :  { %v820_v38 = vcombine.low %v812_v20, %v819_v31  ;;  %vm209_vm7 = vcmp.ne.s32.totalorder %v164_v32, 0  ;;  %vm210_vm8 = vcmp.ne.s32.totalorder %v168_v33, 0  ;;  %v629_v39 = vrot.slane %v26_v3, %v922_v18 }
  0x43   :  { %vm211_vm9 = vcmp.ne.s32.totalorder %v172_v34, 0  ;;  %vm212_vm10 = vcmp.ne.s32.totalorder %v176_v35, 0  ;;  %v236_v40 = vsel %vm209_vm7, 1, %v887_v8  ;;  %v237_v41 = vsel %vm210_vm8, 1, %v887_v8 }
  0x44   :  { %865 = vst [vmem:[%s1145_s2 + $0x20] sm:$0xff] %v820_v38  ;;  %v238_v43 = vsel %vm211_vm9, 1, %v887_v8  ;;  %v239_v44 = vsel %vm212_vm10, 1, %v887_v8  ;;  %v326_v45 = vrot.slane %v236_v40, %v918_v15  ;;  %v330_v46 = vrot.slane %v237_v41, %v918_v15 }
  0x45   :  { %v334_v47 = vrot.slane %v238_v43, %v918_v15  ;;  %v338_v48 = vrot.slane %v239_v44, %v918_v15  ;;  %v486_v49 = vcombine.high %v484_v36, %v484_v36  ;;  %v636_v50 = vrot.slane %v622_v21, %v922_v18 }
  0x46   :  { %vm371_vm11 = vcmp.eq.s32.totalorder %v326_v45, 1  ;;  %vm372_vm12 = vcmp.eq.s32.totalorder %v330_v46, 1  ;;  %v637_v52 = vcombine.high %v629_v39, %v629_v39  ;;  %vm20_vm13 = vnez %v16_v42 }
  0x47   :  { %vm373_vm14 = vcmp.eq.s32.totalorder %v334_v47, 1  ;;  %vm374_vm15 = vcmp.eq.s32.totalorder %v338_v48, 1  ;;  %v638_v53 = vcombine.high %v636_v50, %v636_v50  ;;  %v702_v54 = vsel %vm371_vm11, %v477_v5, %v629_v39 }
  0x48   :  { %v703_v55 = vsel %vm372_vm12, %v485_v37, %v637_v52  ;;  %v704_v56 = vsel %vm373_vm14, %v484_v36, %v636_v50  ;;  %v34_v57 = vsub.f32 1.0, %v27_v51  ;;  %v38_v58 = vsel %vm20_vm13, 16843009, %v887_v8 }
  0x49   :  { %v705_v59 = vsel %vm374_vm15, %v486_v49, %v638_v53  ;;  %v821_v60 = vcombine.low %v702_v54, %v703_v55  ;;  %v51_v61 = vunpack.c.0.s8 %v38_v58  ;;  %v52_v62 = vunpack.c.1.s8 %v38_v58 }
  0x4a   :  { %v822_v63 = vcombine.low %v704_v56, %v705_v59  ;;  %v487_v0 = vcombine.high %v34_v57, %v34_v57  ;;  %v494_v1 = vrot.slane %v34_v57, %v922_v18  ;;  %v639_v3 = vcombine.high %v27_v51, %v27_v51 }
  0x4b   :  { %v829_v2 = vrot.slane %v821_v60, %v922_v18  ;;  %vm65_vm0 = vcmp.ne.s32.totalorder %v51_v61, 0  ;;  %vm66_vm1 = vcmp.ne.s32.totalorder %v52_v62, 0  ;;  %v646_v9 = vrot.slane %v27_v51, %v922_v18 }
  0x4c   :  { %v836_v4 = vrot.slane %v822_v63, %v922_v18  ;;  %v79_v6 = vsel %vm65_vm0, 1, %v887_v8  ;;  %v80_v7 = vsel %vm66_vm1, 1, %v887_v8  ;;  %v501_v14 = vrot.slane %v487_v0, %v922_v18 }
  0x4d   :  { %v180_v10 = vrot.slane %v79_v6, %v918_v15  ;;  %v184_v11 = vrot.slane %v79_v6, %v920_v16  ;;  %v188_v12 = vrot.slane %v80_v7, %v918_v15  ;;  %v502_v17 = vcombine.high %v494_v1, %v494_v1 }
  0x4e   :  { %v837_v13 = vcombine.low %v829_v2, %v836_v4  ;;  %v653_v19 = vrot.slane %v639_v3, %v922_v18  ;;  %v654_v23 = vcombine.high %v646_v9, %v646_v9  ;;  %vm867_vm5 = vcmask 1041408  }
  0x4f   :  { %vm213_vm2 = vcmp.ne.s32.totalorder %v180_v10, 0  ;;  %vm214_vm3 = vcmp.ne.s32.totalorder %v184_v11, 0  ;;  %vm215_vm4 = vcmp.ne.s32.totalorder %v188_v12, 0  ;;  %vm868_vm6 = vcmask 1043458  }
  0x50   :  { %866 = vst [vmem:[%s1145_s2 + $0x28] sm:$0xff] %v837_v13  ;;  %v240_v21 = vsel %vm213_vm2, 1, %v887_v8  ;;  %v241_v22 = vsel %vm214_vm3, 1, %v887_v8  ;;  %v242_v16 = vsel %vm215_vm4, 1, %v887_v8  ;;  %vm869_vm10 = vmor %vm868_vm6, %vm867_vm5  ;;  %vm870_vm11 = vcmask 381956  }
  0x51   :  { %v342_v24 = vrot.slane %v240_v21, %v918_v15  ;;  %v346_v25 = vrot.slane %v241_v22, %v918_v15  ;;  %v350_v26 = vrot.slane %v242_v16, %v918_v15  ;;  %vm871_vm12 = vmor %vm870_vm11, %vm869_vm10 }
  0x53   :  { %vm375_vm7 = vcmp.eq.s32.totalorder %v342_v24, 1  ;;  %vm376_vm8 = vcmp.eq.s32.totalorder %v346_v25, 1  ;;  %vm377_vm9 = vcmp.eq.s32.totalorder %v350_v26, 1 }
  0x54   :  { %v706_v27 = vsel %vm375_vm7, %v494_v1, %v646_v9  ;;  %v707_v28 = vsel %vm376_vm8, %v502_v17, %v654_v23  ;;  %v708_v29 = vsel %vm377_vm9, %v501_v14, %v653_v19 }
  0x55   :  { %v838_v30 = vcombine.low %v706_v27, %v707_v28  ;;  %v852_v5 = vrot.slane %v708_v29, %v922_v18 }
  0x57   :  { %v845_v8 = vrot.slane %v838_v30, %v922_v18 }
  0x59   :  { %v853_v20 = vcombine.low %v845_v8, %v852_v5 }
  0x5b   :  { %872 = vst.msk [vmem:[%s1145_s2 + $0x30] sm:$0x3f] %vm871_vm12, %v853_v20 }

</bundles_post_ra>
